<compile_context>
chip_gen: v7x
topology: tpu7x:2x2x1
jax: 0.10.0
libtpu: 0.0.40
codegen_flags: <defaults>
</compile_context>

<pallas_src>
import numpy as np
import jax
import jax.numpy as jnp
from jax.experimental import pallas as pl
from jax.experimental.pallas import tpu as pltpu

N_GH = 20  # GPyTorch GaussHermiteQuadrature1D default num_locations

# Gauss-Hermite nodes / weights (GPyTorch convention: weights /= sqrt(pi)),
# computed once at import time and packed into a single (2, Q) operand.
_GH_LOCS_NP, _GH_WTS_NP = np.polynomial.hermite.hermgauss(N_GH)
_GH_PACKED = np.stack(
    [_GH_LOCS_NP, _GH_WTS_NP / np.sqrt(np.pi)]).astype(np.float32)  # (2, Q)


def _frcl_kernel(x_ref, w_ref, b_ref, lmu_ref, t_ref, gh_ref, out_ref):
    # phi = base(x): (B, D) @ (D, H) + (1, H)   -- f32 accumulation on the MXU.
    phi = jnp.dot(x_ref[...], w_ref[...],
                  preferred_element_type=jnp.float32) + b_ref[...]

    # Fused RHS [L | mu] -> one MXU pass yields both phi@L and the means.
    vm = jnp.dot(phi, lmu_ref[...], preferred_element_type=jnp.float32)
    h = lmu_ref.shape[1] - 1
    v = vm[:, :h]                       # phi @ L   (B, H), lane-aligned slice
    means = vm[:, h:h + 1]              # phi @ mu  (B, 1)
    variances = jnp.sum(v * v, axis=-1, keepdims=True)            # (B, 1)

    # Fold target into the per-sample affine terms before the (B, Q) broadcast.
    t = t_ref[...]                                                 # (B, 1)
    tm = -t * means                                                # (B, 1)
    ts = -t * jnp.sqrt(2.0 * variances)                            # (B, 1)
    locs = gh_ref[0:1, :]                                          # (1, Q)
    wts = gh_ref[1:2, :]                                           # (1, Q)
    z = ts * locs + tm                                             # (B, Q)

    # loglik = -log(1 + exp(z)) = -softplus(z); stable form avoids exp overflow.
    softplus = jnp.maximum(z, 0.0) + jnp.log(1.0 + jnp.exp(-jnp.abs(z)))

    # In-kernel batch + quadrature reduction -> single scalar to SMEM.
    out_ref[0, 0] = jnp.sum(-softplus * wts)


def frcl_quadrature_sum(x_flat, w_base, b_base, mu, L, target, gh_packed,
                        mxu_dtype=jnp.float32):
    """Sum over the batch of the 20-pt Gauss-Hermite expected log-likelihood."""
    B, _ = x_flat.shape
    H = mu.shape[0]

    b2d = b_base.reshape(1, H).astype(jnp.float32)
    lmu = jnp.concatenate(
        [L, mu.reshape(H, 1)], axis=1).astype(jnp.float32)          # (H, H+1)
    t2d = target.reshape(B, 1).astype(jnp.float32)

    vmem = pl.BlockSpec(memory_space=pltpu.MemorySpace.VMEM)
    smem = pl.BlockSpec(memory_space=pltpu.MemorySpace.SMEM)

    # TODO(synk): at real conv-feature scale, tile the K (=D) dimension on a
    # grid with a VMEM f32 accumulator (+ pl.when init/finalize) and cast
    # x/W_base to bf16 (mxu_dtype) so the slabs fit v7x's 64 MiB VMEM; for
    # B >> 128, tile the batch axis and mark it "parallel" for v7x's 2 TCs.
    out = pl.pallas_call(
        _frcl_kernel,
        out_shape=jax.ShapeDtypeStruct((1, 1), jnp.float32),
        in_specs=[vmem] * 6,
        out_specs=smem,
    )(x_flat.astype(mxu_dtype), w_base.astype(mxu_dtype), b2d, lmu, t2d,
      gh_packed)
    return out[0, 0]


def frcl_forward(x, target, N_k, w_base, b_base, mu, L, sigma_prior=1.0,
                 mxu_dtype=jnp.float32):
    """Returns -ELBO, matching FRCL.forward with an empty previous-task list."""
    B = x.shape[0]
    x_flat = x.reshape(B, -1).astype(jnp.float32)
    gh = jnp.asarray(_GH_PACKED)

    quad_sum = frcl_quadrature_sum(x_flat, w_base, b_base, mu, L, target, gh,
                                   mxu_dtype=mxu_dtype)
    elbo = quad_sum / B

    # KL( N(mu, L L^T) || N(0, sigma_prior * I) )  (analytic, scalar glue).
    h = mu.shape[0]
    logdet_q = 2.0 * jnp.sum(jnp.log(jnp.diag(L)))
    kl = 0.5 * (jnp.sum(L * L) / sigma_prior
                + jnp.dot(mu, mu) / sigma_prior
                - h + h * jnp.log(jnp.asarray(sigma_prior, jnp.float32))
                - logdet_q)
    kls = -kl
    # TODO(synk): previous-task KL terms (prev_tasks_distr loop) omitted —
    # the list is empty for a freshly constructed FRCL module.
    elbo = elbo + kls / N_k
    return -elbo


def _frcl_forward_ref(x, target, N_k, w_base, b_base, mu, L, sigma_prior=1.0):
    """Pure-JAX reference of the same forward pass (for correctness check)."""
    B = x.shape[0]
    x_flat = x.reshape(B, -1).astype(jnp.float32)
    phi = x_flat @ w_base + b_base
    means = phi @ mu
    cov = L @ L.T
    variances = jnp.diagonal(phi @ cov @ phi.T)
    locs = jnp.asarray(_GH_PACKED[0])
    wts = jnp.asarray(_GH_PACKED[1])
    shifted = jnp.sqrt(2.0 * variances)[:, None] * locs[None, :] + means[:, None]
    z = -target[:, None] * shifted
    loglik = -(jnp.maximum(z, 0.0) + jnp.log1p(jnp.exp(-jnp.abs(z))))
    quad = jnp.sum(loglik * wts[None, :], axis=-1)
    elbo = jnp.sum(quad) / B
    h = mu.shape[0]
    logdet_q = 2.0 * jnp.sum(jnp.log(jnp.diag(L)))
    kl = 0.5 * (jnp.sum(L * L) / sigma_prior + jnp.dot(mu, mu) / sigma_prior
                - h + h * jnp.log(jnp.asarray(sigma_prior, jnp.float32))
                - logdet_q)
    return -(elbo - kl / N_k)


if __name__ == "__main__":
    key = jax.random.PRNGKey(0)
    B, C, Hs, Ws = 8, 4, 16, 16
    h_dim = 32
    D_in = C * Hs * Ws
    N_k = 100

    k_x, k_t, k_w, k_b, k_mu = jax.random.split(key, 5)
    x = jax.random.normal(k_x, (B, C, Hs, Ws), dtype=jnp.float32)
    target = jnp.where(jax.random.bernoulli(k_t, 0.5, (B,)), 1.0, -1.0).astype(
        jnp.float32)

    # Deterministic parameter init (shapes from FRCL.__init__ + linear base):
    w_base = jax.random.normal(k_w, (D_in, h_dim), dtype=jnp.float32) / np.sqrt(D_in)
    b_base = jax.random.normal(k_b, (h_dim,), dtype=jnp.float32) * 0.01
    mu = 0.1 * jax.random.normal(k_mu, (h_dim,), dtype=jnp.float32)  # ~N(0, 0.1)
    L = jnp.eye(h_dim, dtype=jnp.float32)                            # scale_tril

    neg_elbo = frcl_forward(x, target, N_k, w_base, b_base, mu, L,
                            sigma_prior=1.0)
    neg_elbo = jax.block_until_ready(neg_elbo)
    ref = jax.block_until_ready(
        _frcl_forward_ref(x, target, N_k, w_base, b_base, mu, L,
                          sigma_prior=1.0))
    assert np.isfinite(float(neg_elbo))
    np.testing.assert_allclose(float(neg_elbo), float(ref), rtol=1e-4, atol=1e-4)
    print("KERNEL_OK")
</pallas_src>

<mosaic_0001>
module attributes {stable_mosaic.version = 11 : i64} {
  func.func @_frcl_kernel(%arg0: memref<8x1024xf32, #tpu.memory_space<vmem>>, %arg1: memref<1024x32xf32, #tpu.memory_space<vmem>>, %arg2: memref<1x32xf32, #tpu.memory_space<vmem>>, %arg3: memref<32x33xf32, #tpu.memory_space<vmem>>, %arg4: memref<8x1xf32, #tpu.memory_space<vmem>>, %arg5: memref<2x20xf32, #tpu.memory_space<vmem>>, %arg6: memref<1x1xf32, #tpu.memory_space<smem>>) attributes {dimension_semantics = [], scalar_prefetch = 0 : i64, scratch_operands = 0 : i64, tpu.core_type = #tpu.core_type<tc>} {
    %c0 = arith.constant 0 : index
    %c0_0 = arith.constant 0 : index
    %0 = vector.load %arg0[%c0, %c0_0] : memref<8x1024xf32, #tpu.memory_space<vmem>>, vector<8x1024xf32>
    %c0_1 = arith.constant 0 : index
    %c0_2 = arith.constant 0 : index
    %1 = vector.load %arg1[%c0_1, %c0_2] : memref<1024x32xf32, #tpu.memory_space<vmem>>, vector<1024x32xf32>
    %cst = arith.constant dense<0.000000e+00> : vector<8x32xf32>
    %2 = tpu.matmul %0, %1, %cst {dimension_numbers = #tpu.dot_dimension_numbers<[1], [0], [0], [1], [0, 0, 1, 1], [], []>} : vector<8x1024xf32>, vector<1024x32xf32>, vector<8x32xf32> -> vector<8x32xf32>
    %c0_3 = arith.constant 0 : index
    %c0_4 = arith.constant 0 : index
    %3 = vector.load %arg2[%c0_3, %c0_4] : memref<1x32xf32, #tpu.memory_space<vmem>>, vector<1x32xf32>
    %4 = vector.broadcast %3 : vector<1x32xf32> to vector<8x32xf32>
    %5 = arith.addf %2, %4 : vector<8x32xf32>
    %c0_5 = arith.constant 0 : index
    %c0_6 = arith.constant 0 : index
    %6 = vector.load %arg3[%c0_5, %c0_6] : memref<32x33xf32, #tpu.memory_space<vmem>>, vector<32x33xf32>
    %cst_7 = arith.constant dense<0.000000e+00> : vector<8x33xf32>
    %7 = tpu.matmul %5, %6, %cst_7 {dimension_numbers = #tpu.dot_dimension_numbers<[1], [0], [0], [1], [0, 0, 1, 1], [], []>} : vector<8x32xf32>, vector<32x33xf32>, vector<8x33xf32> -> vector<8x33xf32>
    %8 = vector.extract_strided_slice %7 {offsets = [0, 0], sizes = [8, 32], strides = [1, 1]} : vector<8x33xf32> to vector<8x32xf32>
    %9 = vector.extract_strided_slice %7 {offsets = [0, 32], sizes = [8, 1], strides = [1, 1]} : vector<8x33xf32> to vector<8x1xf32>
    %10 = arith.mulf %8, %8 : vector<8x32xf32>
    %cst_8 = arith.constant dense<0.000000e+00> : vector<8xf32>
    %11 = vector.multi_reduction <add>, %10, %cst_8 [1] : vector<8x32xf32> to vector<8xf32>
    %12 = vector.shape_cast %11 : vector<8xf32> to vector<8x1xf32>
    %c0_9 = arith.constant 0 : index
    %c0_10 = arith.constant 0 : index
    %13 = vector.load %arg4[%c0_9, %c0_10] : memref<8x1xf32, #tpu.memory_space<vmem>>, vector<8x1xf32>
    %cst_11 = arith.constant 0.000000e+00 : f32
    %14 = vector.broadcast %cst_11 : f32 to vector<8x1xf32>
    %15 = arith.subf %14, %13 : vector<8x1xf32>
    %16 = arith.mulf %15, %9 : vector<8x1xf32>
    %cst_12 = arith.constant 0.000000e+00 : f32
    %17 = vector.broadcast %cst_12 : f32 to vector<8x1xf32>
    %18 = arith.subf %17, %13 : vector<8x1xf32>
    %cst_13 = arith.constant 2.000000e+00 : f32
    %19 = vector.broadcast %cst_13 : f32 to vector<8x1xf32>
    %20 = arith.mulf %19, %12 : vector<8x1xf32>
    %21 = math.sqrt %20 : vector<8x1xf32>
    %22 = arith.mulf %18, %21 : vector<8x1xf32>
    %c0_14 = arith.constant 0 : index
    %c0_15 = arith.constant 0 : index
    %23 = vector.load %arg5[%c0_14, %c0_15] : memref<2x20xf32, #tpu.memory_space<vmem>>, vector<1x20xf32>
    %c1 = arith.constant 1 : index
    %c0_16 = arith.constant 0 : index
    %24 = vector.load %arg5[%c1, %c0_16] : memref<2x20xf32, #tpu.memory_space<vmem>>, vector<1x20xf32>
    %25 = vector.broadcast %22 : vector<8x1xf32> to vector<8x20xf32>
    %26 = vector.broadcast %23 : vector<1x20xf32> to vector<8x20xf32>
    %27 = arith.mulf %25, %26 : vector<8x20xf32>
    %28 = vector.broadcast %16 : vector<8x1xf32> to vector<8x20xf32>
    %29 = arith.addf %27, %28 : vector<8x20xf32>
    %cst_17 = arith.constant 0.000000e+00 : f32
    %30 = vector.broadcast %cst_17 : f32 to vector<8x20xf32>
    %31 = arith.maximumf %29, %30 : vector<8x20xf32>
    %32 = math.absf %29 : vector<8x20xf32>
    %cst_18 = arith.constant 0.000000e+00 : f32
    %33 = vector.broadcast %cst_18 : f32 to vector<8x20xf32>
    %34 = arith.subf %33, %32 : vector<8x20xf32>
    %35 = math.exp %34 : vector<8x20xf32>
    %cst_19 = arith.constant 1.000000e+00 : f32
    %36 = vector.broadcast %cst_19 : f32 to vector<8x20xf32>
    %37 = arith.addf %36, %35 : vector<8x20xf32>
    %38 = math.log %37 : vector<8x20xf32>
    %39 = arith.addf %31, %38 : vector<8x20xf32>
    %cst_20 = arith.constant 0.000000e+00 : f32
    %40 = vector.broadcast %cst_20 : f32 to vector<8x20xf32>
    %41 = arith.subf %40, %39 : vector<8x20xf32>
    %42 = vector.broadcast %24 : vector<1x20xf32> to vector<8x20xf32>
    %43 = arith.mulf %41, %42 : vector<8x20xf32>
    %44 = vector.shape_cast %43 : vector<8x20xf32> to vector<1x8x20xf32>
    %cst_21 = arith.constant dense<0.000000e+00> : vector<1xf32>
    %45 = vector.multi_reduction <add>, %44, %cst_21 [1, 2] : vector<1x8x20xf32> to vector<1xf32>
    %46 = vector.shape_cast %45 : vector<1xf32> to vector<1x1x1xf32>
    %47 = vector.extract %46[0, 0, 0] : f32 from vector<1x1x1xf32>
    %c0_22 = arith.constant 0 : index
    %c0_23 = arith.constant 0 : index
    %48 = memref.load %arg6[%c0_22, %c0_23] : memref<1x1xf32, #tpu.memory_space<smem>>
    memref.store %47, %arg6[%c0_22, %c0_23] : memref<1x1xf32, #tpu.memory_space<smem>>
    return
  }
}

</mosaic_0001>

<bundles_post_ra>
// kernel: tpu_custom_call.1
= control target key start
LH: loop header
LB: loop body
LE: loop exit
PB: predicated region body
PF: predicated region fallthrough
CT: control target
= control target key end

     0   :  { %s1411_s0 = inlined_call_operand.vmem [shape: f32[8,1024], index: 0, kind: input, shape index: {}]   ;;  %s1412_s1 = inlined_call_operand.vmem [shape: f32[1024,32], index: 1, kind: input, shape index: {}]   ;;  %s1413_s2 = inlined_call_operand.vmem [shape: f32[1,32], index: 2, kind: input, shape index: {}]   ;;  %s1414_s3 = inlined_call_operand.vmem [shape: f32[32,33], index: 3, kind: input, shape index: {}]   ;;  %s1415_s4 = inlined_call_operand.vmem [shape: f32[8,1], index: 4, kind: input, shape index: {}]   ;;  %s1416_s5 = inlined_call_operand.vmem [shape: f32[2,20], index: 5, kind: input, shape index: {}]   ;;  %s1417_s6 = inlined_call_operand.hbm [shape: f32[1,1], index: 6, kind: output, shape index: {}]  }
   0x1   :  { %v48_v0 = vld [vmem:[%s1412_s1 + $0x80] sm:$0xff]  ;;  %v49_v1 = vld [vmem:[%s1412_s1 + $0x88] sm:$0xff]  ;;  %v50_v11 = vld [vmem:[%s1412_s1 + $0x90] sm:$0xff] }
   0x2   :  { %v32_v2 = vld [vmem:[%s1412_s1] sm:$0xff]  ;;  %v764_v3 = vpack.c.bf16 %v49_v1, %v48_v0  ;;  %v33_v4 = vld [vmem:[%s1412_s1 + $0x8] sm:$0xff]  ;;  %v51_v13 = vld [vmem:[%s1412_s1 + $0x98] sm:$0xff] }
   0x3   :  { %v80_v5 = vld [vmem:[%s1412_s1 + $0x180] sm:$0xff]  ;;  %v81_v6 = vld [vmem:[%s1412_s1 + $0x188] sm:$0xff]  ;;  %v766_v7 = vpack.c.bf16 %v33_v4, %v32_v2  ;;  %v34_v14 = vld [vmem:[%s1412_s1 + $0x10] sm:$0xff]  ;;  %v768_v16 = vpack.c.bf16 %v51_v13, %v50_v11 }
   0x4   :  { %v796_v8 = vpack.c.bf16 %v81_v6, %v80_v5  ;;  %v64_v9 = vld [vmem:[%s1412_s1 + $0x100] sm:$0xff]  ;;  %v65_v10 = vld [vmem:[%s1412_s1 + $0x108] sm:$0xff]  ;;  %765 = vmatprep.subr.bf16.mxu0 %v764_v3  ;;  %v35_v15 = vld [vmem:[%s1412_s1 + $0x18] sm:$0xff] }
   0x5   :  { %v798_v12 = vpack.c.bf16 %v65_v10, %v64_v9  ;;  %767 = vmatpush3.bf16.msra.mxu0 %v766_v7  ;;  %v770_v17 = vpack.c.bf16 %v35_v15, %v34_v14  ;;  %v82_v18 = vld [vmem:[%s1412_s1 + $0x190] sm:$0xff]  ;;  %v83_v19 = vld [vmem:[%s1412_s1 + $0x198] sm:$0xff]  ;;  %v52_v23 = vld [vmem:[%s1412_s1 + $0xa0] sm:$0xff] }
   0x6   :  { %797 = vmatprep.subr.bf16.mxu1 %v796_v8  ;;  %v66_v20 = vld [vmem:[%s1412_s1 + $0x110] sm:$0xff]  ;;  %v800_v21 = vpack.c.bf16 %v83_v19, %v82_v18  ;;  %v67_v22 = vld [vmem:[%s1412_s1 + $0x118] sm:$0xff]  ;;  %v53_v24 = vld [vmem:[%s1412_s1 + $0xa8] sm:$0xff]  ;;  %769 = vmatprep.subr.bf16.mxu0 %v768_v16 }
   0x7   :  { %799 = vmatpush3.bf16.msra.mxu1 %v798_v12  ;;  %v802_v25 = vpack.c.bf16 %v67_v22, %v66_v20  ;;  %v772_v26 = vpack.c.bf16 %v53_v24, %v52_v23  ;;  %v36_v27 = vld [vmem:[%s1412_s1 + $0x20] sm:$0xff]  ;;  %v37_v28 = vld [vmem:[%s1412_s1 + $0x28] sm:$0xff]  ;;  %v54_v35 = vld [vmem:[%s1412_s1 + $0xb0] sm:$0xff] }
   0x8   :  { %v84_v29 = vld [vmem:[%s1412_s1 + $0x1a0] sm:$0xff]  ;;  %801 = vmatprep.subr.bf16.mxu1 %v800_v21  ;;  %v85_v30 = vld [vmem:[%s1412_s1 + $0x1a8] sm:$0xff]  ;;  %v774_v33 = vpack.c.bf16 %v37_v28, %v36_v27  ;;  %v55_v36 = vld [vmem:[%s1412_s1 + $0xb8] sm:$0xff] }
   0x9   :  { %v68_v31 = vld [vmem:[%s1412_s1 + $0x120] sm:$0xff]  ;;  %v69_v32 = vld [vmem:[%s1412_s1 + $0x128] sm:$0xff]  ;;  %771 = vmatpush3.bf16.msra.mxu0 %v770_v17  ;;  %v804_v34 = vpack.c.bf16 %v85_v30, %v84_v29  ;;  %v38_v37 = vld [vmem:[%s1412_s1 + $0x30] sm:$0xff]  ;;  %v776_v39 = vpack.c.bf16 %v55_v36, %v54_v35 }
   0xa   :  { %773 = vmatprep.subr.bf16.mxu0 %v772_v26  ;;  %v806_v38 = vpack.c.bf16 %v69_v32, %v68_v31  ;;  %v39_v40 = vld [vmem:[%s1412_s1 + $0x38] sm:$0xff]  ;;  %v86_v41 = vld [vmem:[%s1412_s1 + $0x1b0] sm:$0xff]  ;;  %v56_v46 = vld [vmem:[%s1412_s1 + $0xc0] sm:$0xff] }
   0xb   :  { %803 = vmatpush3.bf16.msra.mxu1 %v802_v25  ;;  %v87_v42 = vld [vmem:[%s1412_s1 + $0x1b8] sm:$0xff]  ;;  %v70_v44 = vld [vmem:[%s1412_s1 + $0x130] sm:$0xff]  ;;  %v57_v47 = vld [vmem:[%s1412_s1 + $0xc8] sm:$0xff]  ;;  %v778_v48 = vpack.c.bf16 %v39_v40, %v38_v37 }
   0xc   :  { %805 = vmatprep.subr.bf16.mxu1 %v804_v34  ;;  %v808_v43 = vpack.c.bf16 %v87_v42, %v86_v41  ;;  %v71_v45 = vld [vmem:[%s1412_s1 + $0x138] sm:$0xff]  ;;  %v88_v49 = vld [vmem:[%s1412_s1 + $0x1c0] sm:$0xff]  ;;  %v89_v50 = vld [vmem:[%s1412_s1 + $0x1c8] sm:$0xff]  ;;  %v780_v52 = vpack.c.bf16 %v57_v47, %v56_v46 }
   0xd   :  { %775 = vmatpush3.bf16.msra.mxu0 %v774_v33  ;;  %v810_v51 = vpack.c.bf16 %v71_v45, %v70_v44  ;;  %v40_v53 = vld [vmem:[%s1412_s1 + $0x40] sm:$0xff]  ;;  %v41_v54 = vld [vmem:[%s1412_s1 + $0x48] sm:$0xff]  ;;  %v812_v56 = vpack.c.bf16 %v89_v50, %v88_v49  ;;  %v58_v58 = vld [vmem:[%s1412_s1 + $0xd0] sm:$0xff] }
   0xe   :  { %777 = vmatprep.subr.bf16.mxu0 %v776_v39  ;;  %v72_v55 = vld [vmem:[%s1412_s1 + $0x140] sm:$0xff]  ;;  %v73_v57 = vld [vmem:[%s1412_s1 + $0x148] sm:$0xff]  ;;  %v59_v59 = vld [vmem:[%s1412_s1 + $0xd8] sm:$0xff]  ;;  %v782_v62 = vpack.c.bf16 %v41_v54, %v40_v53 }
   0xf   :  { %807 = vmatpush3.bf16.msra.mxu1 %v806_v38  ;;  %v90_v60 = vld [vmem:[%s1412_s1 + $0x1d0] sm:$0xff]  ;;  %v91_v61 = vld [vmem:[%s1412_s1 + $0x1d8] sm:$0xff]  ;;  %v814_v63 = vpack.c.bf16 %v73_v57, %v72_v55  ;;  %v784_v0 = vpack.c.bf16 %v59_v59, %v58_v58  ;;  %v60_v6 = vld [vmem:[%s1412_s1 + $0xe0] sm:$0xff] }
  0x10   :  { %809 = vmatprep.subr.bf16.mxu1 %v808_v43  ;;  %v42_v1 = vld [vmem:[%s1412_s1 + $0x50] sm:$0xff]  ;;  %v43_v2 = vld [vmem:[%s1412_s1 + $0x58] sm:$0xff]  ;;  %v816_v4 = vpack.c.bf16 %v91_v61, %v90_v60  ;;  %v61_v7 = vld [vmem:[%s1412_s1 + $0xe8] sm:$0xff] }
  0x11   :  { %779 = vmatpush3.bf16.msra.mxu0 %v778_v48  ;;  %v74_v3 = vld [vmem:[%s1412_s1 + $0x150] sm:$0xff]  ;;  %v75_v5 = vld [vmem:[%s1412_s1 + $0x158] sm:$0xff]  ;;  %v92_v8 = vld [vmem:[%s1412_s1 + $0x1e0] sm:$0xff]  ;;  %v786_v10 = vpack.c.bf16 %v43_v2, %v42_v1  ;;  %v788_v14 = vpack.c.bf16 %v61_v7, %v60_v6 }
  0x12   :  { %781 = vmatprep.subr.bf16.mxu0 %v780_v52  ;;  %v93_v9 = vld [vmem:[%s1412_s1 + $0x1e8] sm:$0xff]  ;;  %v44_v11 = vld [vmem:[%s1412_s1 + $0x60] sm:$0xff]  ;;  %v818_v13 = vpack.c.bf16 %v75_v5, %v74_v3  ;;  %v62_v19 = vld [vmem:[%s1412_s1 + $0xf0] sm:$0xff] }
  0x13   :  { %811 = vmatpush3.bf16.msra.mxu1 %v810_v51  ;;  %v45_v12 = vld [vmem:[%s1412_s1 + $0x68] sm:$0xff]  ;;  %v76_v15 = vld [vmem:[%s1412_s1 + $0x160] sm:$0xff]  ;;  %v820_v18 = vpack.c.bf16 %v93_v9, %v92_v8  ;;  %v63_v20 = vld [vmem:[%s1412_s1 + $0xf8] sm:$0xff] }
  0x14   :  { %813 = vmatprep.subr.bf16.mxu1 %v812_v56  ;;  %v77_v16 = vld [vmem:[%s1412_s1 + $0x168] sm:$0xff]  ;;  %v27_v21 = vld [vmem:[%s1411_s0 + $0x18] sm:$0xff]  ;;  %v94_v22 = vld [vmem:[%s1412_s1 + $0x1f0] sm:$0xff]  ;;  %v790_v24 = vpack.c.bf16 %v45_v12, %v44_v11  ;;  %v792_v26 = vpack.c.bf16 %v63_v20, %v62_v19 }
  0x15   :  { %783 = vmatpush3.bf16.msra.mxu0 %v782_v62  ;;  %v25_v17 = vld [vmem:[%s1411_s0 + $0x8] sm:$0xff]  ;;  %v95_v23 = vld [vmem:[%s1412_s1 + $0x1f8] sm:$0xff]  ;;  %301 = vmatprep.mubr.f32.mxu1 %v27_v21  ;;  %v822_v25 = vpack.c.bf16 %v77_v16, %v76_v15  ;;  %v46_v27 = vld [vmem:[%s1412_s1 + $0x70] sm:$0xff] }
  0x16   :  { %785 = vmatprep.subr.bf16.mxu0 %v784_v0  ;;  %231 = vmatprep.mubr.f32.mxu0 %v25_v17  ;;  %v47_v28 = vld [vmem:[%s1412_s1 + $0x78] sm:$0xff]  ;;  %v78_v29 = vld [vmem:[%s1412_s1 + $0x170] sm:$0xff]  ;;  %v824_v30 = vpack.c.bf16 %v95_v23, %v94_v22  ;;  %v112_v32 = vld [vmem:[%s1412_s1 + $0x280] sm:$0xff] }
  0x17   :  { %815 = vmatpush3.bf16.msra.mxu1 %v814_v63  ;;  %v79_v31 = vld [vmem:[%s1412_s1 + $0x178] sm:$0xff]  ;;  %v113_v33 = vld [vmem:[%s1412_s1 + $0x288] sm:$0xff]  ;;  %v144_v34 = vld [vmem:[%s1412_s1 + $0x380] sm:$0xff]  ;;  %v794_v36 = vpack.c.bf16 %v47_v28, %v46_v27 }
  0x18   :  { %817 = vmatprep.subr.bf16.mxu1 %v816_v4  ;;  %v145_v35 = vld [vmem:[%s1412_s1 + $0x388] sm:$0xff]  ;;  %v826_v37 = vpack.c.bf16 %v79_v31, %v78_v29  ;;  %v828_v38 = vpack.c.bf16 %v113_v33, %v112_v32  ;;  %v96_v39 = vld [vmem:[%s1412_s1 + $0x200] sm:$0xff]  ;;  %v114_v44 = vld [vmem:[%s1412_s1 + $0x290] sm:$0xff] }
  0x19   :  { %787 = vmatpush3.bf16.msra.mxu0 %v786_v10  ;;  %v97_v40 = vld [vmem:[%s1412_s1 + $0x208] sm:$0xff]  ;;  %v128_v41 = vld [vmem:[%s1412_s1 + $0x300] sm:$0xff]  ;;  %v860_v42 = vpack.c.bf16 %v145_v35, %v144_v34  ;;  %v115_v45 = vld [vmem:[%s1412_s1 + $0x298] sm:$0xff] }
  0x1a   :  { %789 = vmatprep.subr.bf16.mxu0 %v788_v14  ;;  %v129_v43 = vld [vmem:[%s1412_s1 + $0x308] sm:$0xff]  ;;  %v146_v46 = vld [vmem:[%s1412_s1 + $0x390] sm:$0xff]  ;;  %v147_v47 = vld [vmem:[%s1412_s1 + $0x398] sm:$0xff]  ;;  %v830_v49 = vpack.c.bf16 %v97_v40, %v96_v39  ;;  %v832_v52 = vpack.c.bf16 %v115_v45, %v114_v44 }
  0x1b   :  { %819 = vmatpush3.bf16.msra.mxu1 %v818_v13  ;;  %v24_v48 = vld [vmem:[%s1411_s0] sm:$0xff]  ;;  %v26_v50 = vld [vmem:[%s1411_s0 + $0x10] sm:$0xff]  ;;  %v862_v51 = vpack.c.bf16 %v129_v43, %v128_v41  ;;  %v99_v54 = vld [vmem:[%s1412_s1 + $0x218] sm:$0xff]  ;;  %v864_v56 = vpack.c.bf16 %v147_v47, %v146_v46 }
  0x1c   :  { %821 = vmatprep.subr.bf16.mxu1 %v820_v18  ;;  %v98_v53 = vld [vmem:[%s1412_s1 + $0x210] sm:$0xff]  ;;  %v131_v57 = vld [vmem:[%s1412_s1 + $0x318] sm:$0xff]  ;;  %v116_v58 = vld [vmem:[%s1412_s1 + $0x2a0] sm:$0xff] }
  0x1d   :  { %791 = vmatpush3.bf16.msra.mxu0 %v790_v24  ;;  %v130_v55 = vld [vmem:[%s1412_s1 + $0x310] sm:$0xff]  ;;  %v117_v59 = vld [vmem:[%s1412_s1 + $0x2a8] sm:$0xff]  ;;  %v148_v60 = vld [vmem:[%s1412_s1 + $0x3a0] sm:$0xff]  ;;  %v834_v62 = vpack.c.bf16 %v99_v54, %v98_v53 }
  0x1e   :  { %793 = vmatprep.subr.bf16.mxu0 %v792_v26  ;;  %v149_v61 = vld [vmem:[%s1412_s1 + $0x3a8] sm:$0xff]  ;;  %v866_v63 = vpack.c.bf16 %v131_v57, %v130_v55  ;;  %v836_v0 = vpack.c.bf16 %v117_v59, %v116_v58  ;;  %v100_v1 = vld [vmem:[%s1412_s1 + $0x220] sm:$0xff]  ;;  %v118_v6 = vld [vmem:[%s1412_s1 + $0x2b0] sm:$0xff] }
  0x1f   :  { %823 = vmatpush3.bf16.msra.mxu1 %v822_v25  ;;  %v101_v2 = vld [vmem:[%s1412_s1 + $0x228] sm:$0xff]  ;;  %v132_v3 = vld [vmem:[%s1412_s1 + $0x320] sm:$0xff]  ;;  %v868_v4 = vpack.c.bf16 %v149_v61, %v148_v60  ;;  %v119_v7 = vld [vmem:[%s1412_s1 + $0x2b8] sm:$0xff] }
  0x20   :  { %825 = vmatprep.subr.bf16.mxu1 %v824_v30  ;;  %v133_v5 = vld [vmem:[%s1412_s1 + $0x328] sm:$0xff]  ;;  %v150_v8 = vld [vmem:[%s1412_s1 + $0x3b0] sm:$0xff]  ;;  %v151_v9 = vld [vmem:[%s1412_s1 + $0x3b8] sm:$0xff]  ;;  %v838_v10 = vpack.c.bf16 %v101_v2, %v100_v1  ;;  %v840_v12 = vpack.c.bf16 %v119_v7, %v118_v6 }
  0x21   :  { %795 = vmatpush3.bf16.msra.mxu0 %v794_v36  ;;  %v870_v11 = vpack.c.bf16 %v133_v5, %v132_v3  ;;  %v102_v13 = vld [vmem:[%s1412_s1 + $0x230] sm:$0xff]  ;;  %v103_v14 = vld [vmem:[%s1412_s1 + $0x238] sm:$0xff]  ;;  %v872_v16 = vpack.c.bf16 %v151_v9, %v150_v8  ;;  %v120_v18 = vld [vmem:[%s1412_s1 + $0x2c0] sm:$0xff] }
  0x22   :  { %829 = vmatprep.subr.bf16.mxu0 %v828_v38  ;;  %v134_v15 = vld [vmem:[%s1412_s1 + $0x330] sm:$0xff]  ;;  %v135_v17 = vld [vmem:[%s1412_s1 + $0x338] sm:$0xff]  ;;  %v121_v19 = vld [vmem:[%s1412_s1 + $0x2c8] sm:$0xff]  ;;  %v842_v22 = vpack.c.bf16 %v103_v14, %v102_v13 }
  0x23   :  { %827 = vmatpush3.bf16.msra.mxu1 %v826_v37  ;;  %v152_v20 = vld [vmem:[%s1412_s1 + $0x3c0] sm:$0xff]  ;;  %v153_v21 = vld [vmem:[%s1412_s1 + $0x3c8] sm:$0xff]  ;;  %v31_v25 = vld [vmem:[%s1411_s0 + $0x38] sm:$0xff]  ;;  %v874_v26 = vpack.c.bf16 %v135_v17, %v134_v15  ;;  %v844_v27 = vpack.c.bf16 %v121_v19, %v120_v18 }
  0x24   :  { %861 = vmatprep.subr.bf16.mxu1 %v860_v42  ;;  %232 = vmatmul.mubr.f32.vlgmr.msra.gmra.mrb[0].mxu0 %v24_v48  ;;  %v104_v23 = vld [vmem:[%s1412_s1 + $0x240] sm:$0xff]  ;;  %v29_v24 = vld [vmem:[%s1411_s0 + $0x28] sm:$0xff] }
  0x25   :  { %831 = vmatpush3.bf16.msra.mxu0 %v830_v49  ;;  %v105_v28 = vld [vmem:[%s1412_s1 + $0x248] sm:$0xff]  ;;  %v136_v29 = vld [vmem:[%s1412_s1 + $0x340] sm:$0xff] }
  0x26   :  { %302 = vmatmul.mubr.f32.vlgmr.msra.gmra.mrb[0].mxu1 %v26_v50  ;;  %833 = vmatprep.subr.bf16.mxu0 %v832_v52 }
  0x27   :  { %863 = vmatpush3.bf16.msra.mxu1 %v862_v51 }
  0x28   :  { %865 = vmatprep.subr.bf16.mxu1 %v864_v56 }
  0x29   :  { %835 = vmatpush3.bf16.msra.mxu0 %v834_v62 }
  0x2a   :  { %837 = vmatprep.subr.bf16.mxu0 %v836_v0 }
  0x2b   :  { %867 = vmatpush3.bf16.msra.mxu1 %v866_v63 }
  0x2c   :  { %869 = vmatprep.subr.bf16.mxu1 %v868_v4 }
  0x2d   :  { %839 = vmatpush3.bf16.msra.mxu0 %v838_v10 }
  0x2e   :  { %841 = vmatprep.subr.bf16.mxu0 %v840_v12 }
  0x2f   :  { %871 = vmatpush3.bf16.msra.mxu1 %v870_v11 }
  0x30   :  { %11 = vsyncpa [#allocation3], 0  ;;  %873 = vmatprep.subr.bf16.mxu1 %v872_v16  ;;  %v876_v30 = vpack.c.bf16 %v153_v21, %v152_v20  ;;  %v137_v31 = vld [vmem:[%s1412_s1 + $0x348] sm:$0xff]  ;;  %v122_v32 = vld [vmem:[%s1412_s1 + $0x2d0] sm:$0xff]  ;;  %371 = vmatprep.mubr.f32.mxu0 %v29_v24  ;;  %v846_v36 = vpack.c.bf16 %v105_v28, %v104_v23  ;;  %v926_v11 = vmov 0.0|0.0   ;;  %vm927_vm0 = vmmov 0  }
  0x31   :  { %v123_v33 = vld [vmem:[%s1412_s1 + $0x2d8] sm:$0xff]  ;;  %v154_v34 = vld [vmem:[%s1412_s1 + $0x3d0] sm:$0xff]  ;;  %441 = vmatprep.mubr.f32.mxu1 %v31_v25  ;;  %843 = vmatpush3.bf16.msra.mxu0 %v842_v22  ;;  %v878_v37 = vpack.c.bf16 %v137_v31, %v136_v29  ;;  %v124_v44 = vld [vmem:[%s1412_s1 + $0x2e0] sm:$0xff]  ;;  %v928_v15 = vmov 0.0   ;;  %vm451_vm1 = vcmask 261120   ;;  %vm578_vm4 = vcmask 162816  }
  0x32   :  { %v155_v35 = vld [vmem:[%s1412_s1 + $0x3d8] sm:$0xff]  ;;  %845 = vmatprep.subr.bf16.mxu0 %v844_v27  ;;  %v848_v38 = vpack.c.bf16 %v123_v33, %v122_v32  ;;  %v106_v39 = vld [vmem:[%s1412_s1 + $0x250] sm:$0xff]  ;;  %v125_v45 = vld [vmem:[%s1412_s1 + $0x2e8] sm:$0xff]  ;;  %s914_s20 = scalar_lea.hbm %s1417_s6, 16 }
  0x33   :  { %875 = vmatpush3.bf16.msra.mxu1 %v874_v26  ;;  %v107_v40 = vld [vmem:[%s1412_s1 + $0x258] sm:$0xff]  ;;  %v138_v41 = vld [vmem:[%s1412_s1 + $0x350] sm:$0xff]  ;;  %v880_v42 = vpack.c.bf16 %v155_v35, %v154_v34  ;;  %v156_v46 = vld [vmem:[%s1412_s1 + $0x3e0] sm:$0xff]  ;;  %v852_v50 = vpack.c.bf16 %v125_v45, %v124_v44  ;;  %p915_p0 = scmp.ne.s32.totalorder %s1417_s6, %s914_s20  ;;  %p918_p1 = scmp.lt.u32.totalorder %s914_s20, %s1417_s6 }
  0x34   :  { %877 = vmatprep.subr.bf16.mxu1 %v876_v30  ;;  %v139_v43 = vld [vmem:[%s1412_s1 + $0x358] sm:$0xff]  ;;  %v157_v47 = vld [vmem:[%s1412_s1 + $0x3e8] sm:$0xff]  ;;  %v850_v48 = vpack.c.bf16 %v107_v40, %v106_v39  ;;  %v108_v51 = vld [vmem:[%s1412_s1 + $0x260] sm:$0xff] }
  0x35   :  { %847 = vmatpush3.bf16.msra.mxu0 %v846_v36  ;;  %v882_v49 = vpack.c.bf16 %v139_v43, %v138_v41  ;;  %v109_v52 = vld [vmem:[%s1412_s1 + $0x268] sm:$0xff]  ;;  %v140_v53 = vld [vmem:[%s1412_s1 + $0x360] sm:$0xff]  ;;  %v884_v54 = vpack.c.bf16 %v157_v47, %v156_v46  ;;  %v126_v56 = vld [vmem:[%s1412_s1 + $0x2f0] sm:$0xff]  ;;  %p920_p2 = pnand %p918_p1, %p915_p0 }
  0x36   :  { %849 = vmatprep.subr.bf16.mxu0 %v848_v38  ;;  %v141_v55 = vld [vmem:[%s1412_s1 + $0x368] sm:$0xff]  ;;  %v127_v57 = vld [vmem:[%s1412_s1 + $0x2f8] sm:$0xff]  ;;  %v158_v58 = vld [vmem:[%s1412_s1 + $0x3f0] sm:$0xff]  ;;  %v854_v60 = vpack.c.bf16 %v109_v52, %v108_v51 }
  0x37   :  { %879 = vmatpush3.bf16.msra.mxu1 %v878_v37  ;;  %v159_v59 = vld [vmem:[%s1412_s1 + $0x3f8] sm:$0xff]  ;;  %v886_v61 = vpack.c.bf16 %v141_v55, %v140_v53  ;;  %v856_v62 = vpack.c.bf16 %v127_v57, %v126_v56  ;;  %v110_v63 = vld [vmem:[%s1412_s1 + $0x270] sm:$0xff]  ;;  %v28_v6 = vld [vmem:[%s1411_s0 + $0x20] sm:$0xff]  ;;  %v929_v37 = vmov 0  }
  0x38   :  { %881 = vmatprep.subr.bf16.mxu1 %v880_v42  ;;  %v111_v0 = vld [vmem:[%s1412_s1 + $0x278] sm:$0xff]  ;;  %v888_v1 = vpack.c.bf16 %v159_v59, %v158_v58  ;;  %v142_v2 = vld [vmem:[%s1412_s1 + $0x370] sm:$0xff]  ;;  %v447_v8 = vld [vmem:[%s1414_s3] sm:$0xff]  ;;  %906 = vset.pattern.permute.xlu1 %v929_v37 }
  0x39   :  { %851 = vmatpush3.bf16.msra.mxu0 %v850_v48  ;;  %v143_v3 = vld [vmem:[%s1412_s1 + $0x378] sm:$0xff]  ;;  %v858_v4 = vpack.c.bf16 %v111_v0, %v110_v63  ;;  %v30_v7 = vld [vmem:[%s1411_s0 + $0x30] sm:$0xff]  ;;  %v448_v9 = vld [vmem:[%s1414_s3 + $0x8] sm:$0xff]  ;;  %907 = vset.pattern.permute.xlu0 %v929_v37 }
  0x3a   :  { %853 = vmatprep.subr.bf16.mxu0 %v852_v50  ;;  %v890_v5 = vpack.c.bf16 %v143_v3, %v142_v2  ;;  %v893_v10 = vpack.c.bf16 %v448_v9, %v447_v8  ;;  %v449_v12 = vld [vmem:[%s1414_s3 + $0x10] sm:$0xff]  ;;  %v450_v13 = vld [vmem:[%s1414_s3 + $0x18] sm:$0xff]  ;;  %v604_v17 = vld [vmem:[%s1413_s2] ss:$0 sm:$0xff]  ;;  %s930_s2 = smov 96  }
  0x3b   :  { %883 = vmatpush3.bf16.msra.mxu1 %v882_v49  ;;  %v896_v14 = vpack.c.bf16 %v450_v13, %v449_v12  ;;  %v529_v41 = vld [vmem:[%s1415_s4] sm:$0xff] }
  0x3c   :  { %885 = vmatprep.subr.bf16.mxu1 %v884_v54  ;;  %v530_v44 = vsub.f32 0.0, %v529_v41  ;;  %v606_v50 = vld [vmem:[%s1416_s5] ss:$0 sm:$0xff]  ;;  %v607_v0 = vld [vmem:[%s1416_s5 + $0x1] ss:$0 sm:$0xff] }
  0x3d   :  { %855 = vmatpush3.bf16.msra.mxu0 %v854_v60 }
  0x3e   :  { %857 = vmatprep.subr.bf16.mxu0 %v856_v62 }
  0x3f   :  { %887 = vmatpush3.bf16.msra.mxu1 %v886_v61 }
  0x40   :  { %889 = vmatprep.subr.bf16.mxu1 %v888_v1 }
  0x41   :  { %859 = vmatpush3.bf16.msra.mxu0 %v858_v4 }
  0x42   :  { %892 = vmatprep.subr.bf16.mxu0 %v926_v11 }
  0x43   :  { %891 = vmatpush3.bf16.msra.mxu1 %v890_v5 }
  0x44   :  { %372 = vmatmul.mubr.f32.vlgmr.msra.gmra.mrb[2].mxu0 %v28_v6 }
  0x45   :  { %894 = vmatpush3.bf16.msra.mxu0 %v893_v10  ;;  %761 = vmatprep.mubr.msk.f32.mxu0 %vm927_vm0, %v928_v15 }
  0x46   :  { %442 = vmatmul.mubr.f32.vlgmr.msra.gmra.mrb[2].mxu1 %v30_v7  ;;  %895 = vmatprep.subr.bf16.mxu0 %v926_v11 }
  0x49   :  { %897 = vmatpush3.bf16.msra.mxu0 %v896_v14 }
  0xf7   :  { %v640_v16 = vpop.f32.mrb[0].mxu0 }
  0xf8   :  { %v641_v18 = vpop.f32.mrb[1].mxu0 }
  0xf9   :  { %v675_v19 = vpop.f32.mrb[0].mxu1  ;;  %v642_v20 = vadd.f32 %v641_v18, %v640_v16 }
  0xfa   :  { %v676_v21 = vpop.f32.mrb[1].mxu1 }
  0xfb   :  { %v677_v22 = vadd.f32 %v676_v21, %v675_v19  ;;  %v234_v23 = vadd.f32 %v642_v20, %v604_v17 }
  0xfd   :  { %v304_v24 = vadd.f32 %v677_v22, %v234_v23 }
 0x117   :  { %v710_v25 = vpop.f32.mrb[2].mxu0 }
 0x118   :  { %v711_v26 = vpop.f32.mrb[3].mxu0 }
 0x119   :  { %v745_v27 = vpop.f32.mrb[2].mxu1  ;;  %v712_v28 = vadd.f32 %v711_v26, %v710_v25 }
 0x11a   :  { %v746_v29 = vpop.f32.mrb[3].mxu1 }
 0x11b   :  { %v747_v30 = vadd.f32 %v746_v29, %v745_v27  ;;  %v374_v31 = vadd.f32 %v712_v28, %v304_v24 }
 0x11d   :  { %v444_v32 = vadd.f32 %v747_v30, %v374_v31 }
 0x11f   :  { %762 = vmatmul.mubr.msk.f32.vlgmr.msra.gmra.mrb[4].mxu0 %vm451_vm1, %v444_v32 }
 0x1f2   :  { %v521_v33 = vpop.f32.mrb[4].mxu0 }
 0x1f3   :  { %v763_v34 = vpop.f32.mrb[5].mxu0  ;;  %v525_v35 = vmul.f32 %v521_v33, %v521_v33 }
 0x1f5   :  { %v526_v36 = vsel %vm451_vm1, %v525_v35, 0.0 }
 0x1f6   :  { %527 = vadd.xlane.f32.xlu0 %v526_v36 }
 0x20c   :  { %532 = vrot.lane.b32.xlu0 %v521_v33, %s930_s2 }
 0x283   :  { %v528_v38 = vpop.xlane.xlu0 %527 }
 0x284   :  { %v536_v39 = vmul.f32 2.0, %v528_v38 }
 0x286   :  { %908 = vrsqrt.f32 %v536_v39  ;;  %vm539_vm2 = vcmp.eq.f32.partialorder %v536_v39, inf  ;;  %v542_v43 = vand.u32 2147483648, %v536_v39  ;;  %vm541_vm3 = vcmp.eq.f32.partialorder %v536_v39, 0.0 }
 0x287   :  { %v533_v48 = vpop.permute.xlu0 %532 }
 0x288   :  { %v535_v49 = vmul.f32 %v533_v48, %v530_v44 }
 0x290   :  { %v909_v40 = vpop.eup %908 }
 0x291   :  { %v538_v42 = vmul.f32 %v909_v40, %v536_v39 }
 0x293   :  { %v540_v45 = vsel %vm539_vm2, %v536_v39, %v538_v42 }
 0x294   :  { %v543_v46 = vsel %vm541_vm3, %v542_v43, %v540_v45 }
 0x295   :  { %v544_v47 = vmul.f32 %v543_v46, %v530_v44 }
 0x297   :  { %549 = vperm.xlu1 %906, %v544_v47  }
 0x29b   :  { %559 = vperm.xlu1 %906, %v535_v49  }
 0x316   :  { %v550_v51 = vpop.permute.xlu1 %549 }
 0x317   :  { %v556_v52 = vmul.f32 %v606_v50, %v550_v51 }
 0x31a   :  { %v560_v53 = vpop.permute.xlu1 %559 }
 0x31b   :  { %v562_v54 = vadd.f32 %v560_v53, %v556_v52 }
 0x31d   :  { %v564_v55 = vand.u32 2147483647, %v562_v54  ;;  %v563_v61 = vmax.f32 %v562_v54, 0.0 }
 0x31f   :  { %v565_v56 = vsub.f32 0.0, %v564_v55 }
 0x321   :  { %v566_v57 = vmul.f32 1.442695, %v565_v56 }
 0x323   :  { %910 = vpow2.f32 %v566_v57 }
 0x32d   :  { %v911_v58 = vpop.eup %910 }
 0x32e   :  { %v568_v59 = vadd.f32 1.0, %v911_v58 }
 0x330   :  { %912 = vlog2.f32 %v568_v59 }
 0x33a   :  { %v913_v60 = vpop.eup %912 }
 0x33b   :  { %v570_v62 = vmul.f32 0.6931472, %v913_v60 }
 0x33d   :  { %v571_v63 = vadd.f32 %v570_v62, %v563_v61 }
 0x33f   :  { %v572_v1 = vsub.f32 0.0, %v571_v63 }
 0x341   :  { %v577_v2 = vmul.f32 %v607_v0, %v572_v1 }
 0x343   :  { %v579_v3 = vsel %vm578_vm4, %v577_v2, 0.0 }
 0x344   :  { %580 = vadd.xlane.f32.xlu1 %v579_v3 }
 0x3d1   :  { %v581_v4 = vpop.xlane.xlu1 %580 }
 0x3d2   :  { %v582_v5 = vrot.slane %v581_v4, 4 }
 0x3d4   :  { %v583_v6 = vadd.f32 %v582_v5, %v581_v4 }
 0x3d6   :  { %v584_v7 = vrot.slane %v583_v6, 2 }
 0x3d8   :  { %v585_v8 = vadd.f32 %v584_v7, %v583_v6 }
 0x3da   :  { %v586_v9 = vrot.slane %v585_v8, 1 }
 0x3dc   :  { %v587_v10 = vadd.f32 %v586_v9, %v585_v8 }
 0x3de   :  { %898 = vpush %v587_v10 }
 0x40f   :  { %s899_s17 = spop %898 }
 0x410   :  { %590 = sst [smem:[#allocation2]] %s899_s17 }
 0x411   :  { %923 = shalt.err (!%p920_p2)
}
 0x412   :  { %s931_s24 = smov [#allocation2]  }
 0x413   :  { %598 = dma.smem_to_hbm %s931_s24, 16, %s1417_s6, [#allocation3]  }
 0x414   :  { %924 = dma.done.wait [#allocation3], 16  }
 0x415   :  { %925 = vsyncadd [#allocation3], 4294967280 }
 0x416   :  { %602 = sfence }
 0x417   :  { %603 = vsyncpa [#allocation3], 1 }

</bundles_post_ra>
